<compile_context>
chip_gen: v7x
topology: tpu7x:2x2x1
jax: 0.10.0
libtpu: 0.0.40
codegen_flags: <defaults>
</compile_context>

<pallas_src>
import functools

import jax
import jax.numpy as jnp
from jax.experimental import pallas as pl
from jax.experimental.pallas import tpu as pltpu

EPS = 1e-6
HIGH = jax.lax.Precision.HIGHEST


def _round_up(x, m):
    return ((x + m - 1) // m) * m


def _device_config():
    """Generation-aware VMEM limit and tile caps."""
    vmem_cap = 128 * 1024 * 1024
    try:
        info = pltpu.get_tpu_info()
        vmem_cap = int(getattr(info, "vmem_capacity_bytes", vmem_cap))
    except Exception:
        pass
    vmem_limit = int(vmem_cap * 0.85)
    if vmem_cap >= 96 * 1024 * 1024:
        # v5e / v6e: 128 MiB VMEM per TensorCore -> big tiles.
        heads_tm_cap, lm_tr_cap, lm_tn_cap = 512, 1024, 512
    else:
        # v7x: 64 MiB VMEM per TensorCore -> stay conservative.
        heads_tm_cap, lm_tr_cap, lm_tn_cap = 256, 512, 512
    return vmem_limit, heads_tm_cap, lm_tr_cap, lm_tn_cap


# --------------------------------------------------------------------------
# Kernel 1: fused per-head pre-lm_head compute (RMSNorms, 2H->H, ResBlocks).
# Grid = (M_tiles, num_heads); heads axis carries prev_hidden in VMEM scratch.
# When `resident` is True the head weights are full-NH VMEM blocks (constant
# index map -> fetched once) indexed dynamically with pl.program_id(1).
# --------------------------------------------------------------------------
def _heads_kernel(res_layer_nums, resident,
                  hid_ref, emb_ref, hw_ref, ew_ref,
                  w1a_ref, w1b_ref, b1_ref, wres_ref, bres_ref,
                  z_ref, prev_ref):
    # First head: seed the carried hidden state from the base-model output.
    @pl.when(pl.program_id(1) == 0)
    def _():
        prev_ref[...] = hid_ref[...].astype(jnp.float32)

    if resident:
        h_idx = pl.program_id(1)
        w1a = w1a_ref[h_idx]
        w1b = w1b_ref[h_idx]
        b1 = b1_ref[h_idx]
        wres = wres_ref[h_idx]
        bres_row = bres_ref[h_idx]
    else:
        w1a = w1a_ref[...]
        w1b = w1b_ref[...]
        b1 = b1_ref[...]
        wres = wres_ref[...]
        bres_row = bres_ref[...]

    # --- RMSNorm(prev_hidden), f32 math, bf16 MXU operand out ---
    h = prev_ref[...]
    var_h = jnp.mean(h * h, axis=-1, keepdims=True)
    nh = (hw_ref[...] * (h * jax.lax.rsqrt(var_h + EPS))).astype(jnp.bfloat16)

    # --- RMSNorm(token_embed) ---
    e = emb_ref[...].astype(jnp.float32)
    var_e = jnp.mean(e * e, axis=-1, keepdims=True)
    ne = (ew_ref[...] * (e * jax.lax.rsqrt(var_e + EPS))).astype(jnp.bfloat16)

    # --- Linear(2H->H) on concat([nh, ne]) == nh @ W1a + ne @ W1b + b1 ---
    y = (jnp.dot(nh, w1a, preferred_element_type=jnp.float32)
         + jnp.dot(ne, w1b, preferred_element_type=jnp.float32)
         + b1)

    # --- ResBlock(s): x + SiLU(x @ Wres + bres), shared weights ---
    # Hoist the bias broadcast out of the unrolled loop (JAX does not CSE it).
    bres = jnp.broadcast_to(bres_row, y.shape)
    for _ in range(res_layer_nums):
        r = jnp.dot(y.astype(jnp.bfloat16), wres,
                    preferred_element_type=jnp.float32) + bres
        y = y + r * jax.nn.sigmoid(r)

    prev_ref[...] = y                       # carry to next head (stays in VMEM)
    z_ref[...] = y.astype(z_ref.dtype)      # bf16 hidden out for the lm_head


def _heads_pallas(hid2d, token_embeds, hw, ew, w1a, w1b, b1, wres, bres,
                  res_layer_nums, tm_cap, vmem_limit):
    """hid2d: (M, H) f32; token_embeds: (NH, M, H) bf16; stacked head params."""
    M, H = hid2d.shape
    NH = token_embeds.shape[0]

    # Pad rows up to the tile multiple instead of shrinking to odd divisors.
    TM = min(tm_cap, _round_up(M, 8))
    Mp = _round_up(M, TM)
    if Mp != M:
        hid2d = jnp.pad(hid2d, ((0, Mp - M), (0, 0)))
        token_embeds = jnp.pad(token_embeds, ((0, 0), (0, Mp - M), (0, 0)))

    # Decide whether all NH heads' weights fit resident in VMEM
    # (double-buffer everything conservatively in the estimate).
    w_bytes = 2 * NH * (3 * H * H * 2 + 2 * H * 4)
    act_bytes = 2 * TM * H * (4 + 2 + 2) + 4 * TM * H + 8 * H
    resident = (w_bytes + act_bytes) < int(0.75 * vmem_limit)

    if resident:
        weight_specs = [
            pl.BlockSpec((NH, H, H), lambda i, h: (0, 0, 0)),   # w1a (resident)
            pl.BlockSpec((NH, H, H), lambda i, h: (0, 0, 0)),   # w1b (resident)
            pl.BlockSpec((NH, 1, H), lambda i, h: (0, 0, 0)),   # b1  (resident)
            pl.BlockSpec((NH, H, H), lambda i, h: (0, 0, 0)),   # wres (resident)
            pl.BlockSpec((NH, 1, H), lambda i, h: (0, 0, 0)),   # bres (resident)
        ]
    else:
        # TODO(synk): for very large H, swap grid to (NH, M_tiles) with an HBM
        # prev-hidden carry (input_output_aliases) so weights stream once.
        weight_specs = [
            pl.BlockSpec((None, H, H), lambda i, h: (h, 0, 0)),  # w1a
            pl.BlockSpec((None, H, H), lambda i, h: (h, 0, 0)),  # w1b
            pl.BlockSpec((None, 1, H), lambda i, h: (h, 0, 0)),  # b1
            pl.BlockSpec((None, H, H), lambda i, h: (h, 0, 0)),  # wres
            pl.BlockSpec((None, 1, H), lambda i, h: (h, 0, 0)),  # bres
        ]

    grid = (Mp // TM, NH)
    kernel = functools.partial(_heads_kernel, res_layer_nums, resident)
    out = pl.pallas_call(
        kernel,
        out_shape=jax.ShapeDtypeStruct((NH, Mp, H), jnp.bfloat16),
        grid_spec=pltpu.PrefetchScalarGridSpec(
            num_scalar_prefetch=0,
            grid=grid,
            in_specs=[
                pl.BlockSpec((TM, H), lambda i, h: (i, 0)),           # hidden
                pl.BlockSpec((None, TM, H), lambda i, h: (h, i, 0)),  # embeds
                pl.BlockSpec((1, H), lambda i, h: (0, 0)),            # rms_h w
                pl.BlockSpec((1, H), lambda i, h: (0, 0)),            # rms_e w
            ] + weight_specs,
            out_specs=pl.BlockSpec((None, TM, H), lambda i, h: (h, i, 0)),
            scratch_shapes=[pltpu.VMEM((TM, H), jnp.float32)],
        ),
        compiler_params=pltpu.CompilerParams(
            dimension_semantics=("parallel", "arbitrary"),
            vmem_limit_bytes=vmem_limit,
        ),
    )(hid2d, token_embeds, hw, ew, w1a, w1b, b1, wres, bres)
    if Mp != M:
        out = out[:, :M]
    return out


# --------------------------------------------------------------------------
# Kernel 2: batched lm_head over all heads: (NH*M, H) @ (H, V) -> (NH*M, V).
# wlm streams from HBM once; z row tile stays resident across the vocab axis.
# Both grid axes are independent output tiles -> both "parallel" (megacore).
# --------------------------------------------------------------------------
def _lm_head_kernel(z_ref, w_ref, out_ref):
    out_ref[...] = jnp.dot(z_ref[...], w_ref[...],
                           preferred_element_type=jnp.float32)


def _lm_head_pallas(z2d, wlm_bf16, tr_cap, tn_cap, vmem_limit):
    R, H = z2d.shape
    V = wlm_bf16.shape[1]

    TR = min(tr_cap, _round_up(R, 8))
    TN = min(tn_cap, _round_up(V, 128))
    Rp = _round_up(R, TR)
    Vp = _round_up(V, TN)
    if Rp != R:
        z2d = jnp.pad(z2d, ((0, Rp - R), (0, 0)))
    if Vp != V:
        wlm_bf16 = jnp.pad(wlm_bf16, ((0, 0), (0, Vp - V)))

    grid = (Rp // TR, Vp // TN)
    out = pl.pallas_call(
        _lm_head_kernel,
        out_shape=jax.ShapeDtypeStruct((Rp, Vp), jnp.float32),
        grid_spec=pltpu.PrefetchScalarGridSpec(
            num_scalar_prefetch=0,
            grid=grid,
            in_specs=[
                pl.BlockSpec((TR, H), lambda i, j: (i, 0)),   # z row tile (resident over j)
                pl.BlockSpec((H, TN), lambda i, j: (0, j)),   # wlm column tile (streams once)
            ],
            out_specs=pl.BlockSpec((TR, TN), lambda i, j: (i, j)),
        ),
        compiler_params=pltpu.CompilerParams(
            dimension_semantics=("parallel", "parallel"),
            vmem_limit_bytes=vmem_limit,
        ),
    )(z2d, wlm_bf16)
    if Rp != R or Vp != V:
        out = out[:R, :V]
    return out


# --------------------------------------------------------------------------
# Full MHC forward (training branch): returns (num_heads, B, S, V) logits.
# --------------------------------------------------------------------------
def mhc_forward(hidden_states, labels, embed_table, wlm, rms_params,
                head_params_list, res_layer_nums, pad_token_id=0):
    B, S, H = hidden_states.shape
    num_heads = len(head_params_list)
    V = wlm.shape[1]
    M = B * S

    vmem_limit, heads_tm_cap, lm_tr_cap, lm_tn_cap = _device_config()

    # Precompute the per-head token-embedding gathers (depend only on labels).
    embeds = []
    for i in range(num_heads):
        shifted = jnp.pad(labels[:, i + 1:], ((0, 0), (0, i + 1)),
                          constant_values=-100)
        true_token = jnp.where(shifted == -100, pad_token_id, shifted)
        embeds.append(embed_table[true_token].reshape(M, H))
    token_embeds = jnp.stack(embeds, axis=0).astype(jnp.bfloat16)  # (NH, M, H)

    # Stack per-head params; matmul weights go to bf16 (f32 accumulation in-kernel).
    w1a = jnp.stack([p['w1a'] for p in head_params_list]).astype(jnp.bfloat16)
    w1b = jnp.stack([p['w1b'] for p in head_params_list]).astype(jnp.bfloat16)
    b1 = jnp.stack([p['b1'] for p in head_params_list]).astype(jnp.float32)
    wres = jnp.stack([p['wres'] for p in head_params_list]).astype(jnp.bfloat16)
    bres = jnp.stack([p['bres'] for p in head_params_list]).astype(jnp.float32)

    hid2d = hidden_states.reshape(M, H).astype(jnp.float32)

    # 1) fused per-head hidden-state computation (weights resident when they fit)
    z_all = _heads_pallas(hid2d, token_embeds,
                          rms_params['hidden_w'], rms_params['embed_w'],
                          w1a, w1b, b1, wres, bres, res_layer_nums,
                          heads_tm_cap, vmem_limit)

    # 2) single tiled lm_head over all heads (wlm streamed from HBM once)
    logits = _lm_head_pallas(z_all.reshape(num_heads * M, H),
                             wlm.astype(jnp.bfloat16),
                             lm_tr_cap, lm_tn_cap, vmem_limit)
    return logits.reshape(num_heads, B, S, V)


# ---------------- pure-JAX f32 reference for verification ----------------
def _rmsnorm_ref(x, w):
    xf = x.astype(jnp.float32)
    var = jnp.mean(xf * xf, axis=-1, keepdims=True)
    return w * (xf * jax.lax.rsqrt(var + EPS))


def mhc_forward_ref(hidden_states, labels, embed_table, wlm, rms_params,
                    head_params_list, res_layer_nums, pad_token_id=0):
    prev = hidden_states.astype(jnp.float32)
    outs = []
    for i, hp in enumerate(head_params_list):
        shifted = jnp.pad(labels[:, i + 1:], ((0, 0), (0, i + 1)),
                          constant_values=-100)
        tok = jnp.where(shifted == -100, pad_token_id, shifted)
        emb = embed_table[tok]
        nh = _rmsnorm_ref(prev, rms_params['hidden_w'][0])
        ne = _rmsnorm_ref(emb, rms_params['embed_w'][0])
        y = (jnp.dot(nh, hp['w1a'], precision=HIGH)
             + jnp.dot(ne, hp['w1b'], precision=HIGH) + hp['b1'][0])
        for _ in range(res_layer_nums):
            r = jnp.dot(y, hp['wres'], precision=HIGH) + hp['bres'][0]
            y = y + r * jax.nn.sigmoid(r)
        outs.append(jnp.dot(y, wlm, precision=HIGH))
        prev = y
    return jnp.stack(outs, axis=0)


if __name__ == "__main__":
    # Small synthetic config.  S=15 and V=1000 deliberately exercise the
    # row / vocab padding paths; the multi-head carry + resident weights are
    # exercised by NUM_HEADS=4.
    B, S, H, V = 2, 15, 128, 1000
    NUM_HEADS, RES_LAYER_NUMS = 4, 2
    PAD_TOKEN_ID = 0

    key = jax.random.PRNGKey(0)
    ks = jax.random.split(key, 8 + 3 * NUM_HEADS)

    # Base-model pieces (synthetic): hidden states, embedding table, lm_head.
    hidden_states = jax.random.normal(ks[0], (B, S, H), jnp.float32)
    labels = jax.random.randint(ks[1], (B, S), 0, V, jnp.int32)
    embed_table = 0.02 * jax.random.normal(ks[2], (V, H), jnp.float32)
    wlm = 0.02 * jax.random.normal(ks[3], (H, V), jnp.float32)  # lm_head, no bias

    # RMSNorm weights init to ones (as in RMSNorm.__init__); stored as (1, H).
    rms_params = {
        'hidden_w': jnp.ones((1, H), jnp.float32),
        'embed_w': jnp.ones((1, H), jnp.float32),
    }

    # Per-head params.  Linear(2H->H): random.  Note: the module zero-inits the
    # ResBlock linear weight; we use small random values here so the kernel's
    # ResBlock matmul path is actually exercised numerically.
    head_params_list = []
    for i in range(NUM_HEADS):
        k1, k2, k3 = ks[8 + 3 * i], ks[9 + 3 * i], ks[10 + 3 * i]
        w1 = 0.02 * jax.random.normal(k1, (2 * H, H), jnp.float32)  # pre-transposed
        head_params_list.append({
            'w1a': w1[:H],                                   # (H, H)
            'w1b': w1[H:],                                   # (H, H)
            'b1': 0.02 * jax.random.normal(k2, (1, H), jnp.float32),
            'wres': 0.02 * jax.random.normal(k3, (H, H), jnp.float32),
            'bres': 0.02 * jax.random.normal(k3, (1, H), jnp.float32),
        })

    out = mhc_forward(hidden_states, labels, embed_table, wlm, rms_params,
                      head_params_list, RES_LAYER_NUMS, PAD_TOKEN_ID)
    out = jax.block_until_ready(out)
    assert out.shape == (NUM_HEADS, B, S, V), out.shape

    ref = mhc_forward_ref(hidden_states, labels, embed_table, wlm, rms_params,
                          head_params_list, RES_LAYER_NUMS, PAD_TOKEN_ID)
    ref = jax.block_until_ready(ref)
    # bf16 MXU operands (f32 accumulation) vs f32/HIGHEST reference -> loosen tol.
    max_err = float(jnp.max(jnp.abs(out - ref)))
    assert jnp.allclose(out, ref, rtol=2e-2, atol=2e-2), max_err

    print("KERNEL_OK")
</pallas_src>

<mosaic_0001>
module attributes {stable_mosaic.version = 11 : i64} {
  func.func @_heads_kernel(%arg0: i32, %arg1: i32, %arg2: memref<32x128xf32, #tpu.memory_space<vmem>>, %arg3: memref<1x32x128xbf16, #tpu.memory_space<vmem>>, %arg4: memref<1x128xf32, #tpu.memory_space<vmem>>, %arg5: memref<1x128xf32, #tpu.memory_space<vmem>>, %arg6: memref<4x128x128xbf16, #tpu.memory_space<vmem>>, %arg7: memref<4x128x128xbf16, #tpu.memory_space<vmem>>, %arg8: memref<4x1x128xf32, #tpu.memory_space<vmem>>, %arg9: memref<4x128x128xbf16, #tpu.memory_space<vmem>>, %arg10: memref<4x1x128xf32, #tpu.memory_space<vmem>>, %arg11: memref<1x32x128xbf16, #tpu.memory_space<vmem>>, %arg12: memref<32x128xf32, #tpu.memory_space<vmem>>) attributes {dimension_semantics = [#tpu.dimension_semantics<parallel>, #tpu.dimension_semantics<arbitrary>], iteration_bounds = array<i64: 1, 4>, scalar_prefetch = 0 : i64, scratch_operands = 1 : i64, tpu.core_type = #tpu.core_type<tc>, window_params = [{transform_indices = @transform_0, window_bounds = array<i64: 32, 128>}, {transform_indices = @transform_1, window_bounds = array<i64: 1, 32, 128>}, {pipeline_mode = #tpu.pipeline_mode<synchronous>, transform_indices = @transform_2, window_bounds = array<i64: 1, 128>}, {pipeline_mode = #tpu.pipeline_mode<synchronous>, transform_indices = @transform_3, window_bounds = array<i64: 1, 128>}, {pipeline_mode = #tpu.pipeline_mode<synchronous>, transform_indices = @transform_4, window_bounds = array<i64: 4, 128, 128>}, {pipeline_mode = #tpu.pipeline_mode<synchronous>, transform_indices = @transform_5, window_bounds = array<i64: 4, 128, 128>}, {pipeline_mode = #tpu.pipeline_mode<synchronous>, transform_indices = @transform_6, window_bounds = array<i64: 4, 1, 128>}, {pipeline_mode = #tpu.pipeline_mode<synchronous>, transform_indices = @transform_7, window_bounds = array<i64: 4, 128, 128>}, {pipeline_mode = #tpu.pipeline_mode<synchronous>, transform_indices = @transform_8, window_bounds = array<i64: 4, 1, 128>}, {transform_indices = @transform_9, window_bounds = array<i64: 1, 32, 128>}]} {
    %c0_i32 = arith.constant 0 : i32
    %0 = arith.cmpi eq, %arg1, %c0_i32 : i32
    %1 = arith.extui %0 : i1 to i32
    %c0_i32_0 = arith.constant 0 : i32
    %2 = arith.cmpi ne, %1, %c0_i32_0 : i32
    scf.if %2 {
      %c0_35 = arith.constant 0 : index
      %c0_36 = arith.constant 0 : index
      %82 = vector.load %arg2[%c0_35, %c0_36] : memref<32x128xf32, #tpu.memory_space<vmem>>, vector<32x128xf32>
      %c0_37 = arith.constant 0 : index
      %c0_38 = arith.constant 0 : index
      %83 = vector.load %arg12[%c0_37, %c0_38] : memref<32x128xf32, #tpu.memory_space<vmem>>, vector<32x128xf32>
      tpu.vector_store %arg12[%c0_37, %c0_38], %82 {strides = array<i32>} : memref<32x128xf32, #tpu.memory_space<vmem>>, vector<32x128xf32>,
    } else {
    }
    %3 = arith.index_cast %arg1 : i32 to index
    %c0 = arith.constant 0 : index
    %c0_1 = arith.constant 0 : index
    %4 = vector.load %arg6[%3, %c0, %c0_1] : memref<4x128x128xbf16, #tpu.memory_space<vmem>>, vector<1x128x128xbf16>
    %5 = vector.shape_cast %4 : vector<1x128x128xbf16> to vector<128x128xbf16>
    %6 = arith.index_cast %arg1 : i32 to index
    %c0_2 = arith.constant 0 : index
    %c0_3 = arith.constant 0 : index
    %7 = vector.load %arg7[%6, %c0_2, %c0_3] : memref<4x128x128xbf16, #tpu.memory_space<vmem>>, vector<1x128x128xbf16>
    %8 = vector.shape_cast %7 : vector<1x128x128xbf16> to vector<128x128xbf16>
    %9 = arith.index_cast %arg1 : i32 to index
    %c0_4 = arith.constant 0 : index
    %c0_5 = arith.constant 0 : index
    %10 = vector.load %arg8[%9, %c0_4, %c0_5] : memref<4x1x128xf32, #tpu.memory_space<vmem>>, vector<1x1x128xf32>
    %11 = vector.shape_cast %10 : vector<1x1x128xf32> to vector<1x128xf32>
    %12 = arith.index_cast %arg1 : i32 to index
    %c0_6 = arith.constant 0 : index
    %c0_7 = arith.constant 0 : index
    %13 = vector.load %arg9[%12, %c0_6, %c0_7] : memref<4x128x128xbf16, #tpu.memory_space<vmem>>, vector<1x128x128xbf16>
    %14 = vector.shape_cast %13 : vector<1x128x128xbf16> to vector<128x128xbf16>
    %15 = arith.index_cast %arg1 : i32 to index
    %c0_8 = arith.constant 0 : index
    %c0_9 = arith.constant 0 : index
    %16 = vector.load %arg10[%15, %c0_8, %c0_9] : memref<4x1x128xf32, #tpu.memory_space<vmem>>, vector<1x1x128xf32>
    %17 = vector.shape_cast %16 : vector<1x1x128xf32> to vector<1x128xf32>
    %c0_10 = arith.constant 0 : index
    %c0_11 = arith.constant 0 : index
    %18 = vector.load %arg12[%c0_10, %c0_11] : memref<32x128xf32, #tpu.memory_space<vmem>>, vector<32x128xf32>
    %19 = arith.mulf %18, %18 : vector<32x128xf32>
    %cst = arith.constant dense<0.000000e+00> : vector<32xf32>
    %20 = vector.multi_reduction <add>, %19, %cst [1] : vector<32x128xf32> to vector<32xf32>
    %21 = vector.shape_cast %20 : vector<32xf32> to vector<32x1xf32>
    %cst_12 = arith.constant 1.280000e+02 : f32
    %22 = vector.broadcast %cst_12 : f32 to vector<32x1xf32>
    %23 = arith.divf %21, %22 : vector<32x1xf32>
    %c0_13 = arith.constant 0 : index
    %c0_14 = arith.constant 0 : index
    %24 = vector.load %arg4[%c0_13, %c0_14] : memref<1x128xf32, #tpu.memory_space<vmem>>, vector<1x128xf32>
    %cst_15 = arith.constant 9.99999997E-7 : f32
    %25 = vector.broadcast %cst_15 : f32 to vector<32x1xf32>
    %26 = arith.addf %23, %25 : vector<32x1xf32>
    %27 = math.rsqrt %26 : vector<32x1xf32>
    %28 = vector.broadcast %27 : vector<32x1xf32> to vector<32x128xf32>
    %29 = arith.mulf %18, %28 : vector<32x128xf32>
    %30 = vector.broadcast %24 : vector<1x128xf32> to vector<32x128xf32>
    %31 = arith.mulf %30, %29 : vector<32x128xf32>
    %32 = arith.truncf %31 : vector<32x128xf32> to vector<32x128xbf16>
    %c0_16 = arith.constant 0 : index
    %c0_17 = arith.constant 0 : index
    %c0_18 = arith.constant 0 : index
    %33 = vector.load %arg3[%c0_16, %c0_17, %c0_18] : memref<1x32x128xbf16, #tpu.memory_space<vmem>>, vector<1x32x128xbf16>
    %34 = vector.shape_cast %33 : vector<1x32x128xbf16> to vector<32x128xbf16>
    %35 = arith.extf %34 : vector<32x128xbf16> to vector<32x128xf32>
    %36 = arith.mulf %35, %35 : vector<32x128xf32>
    %cst_19 = arith.constant dense<0.000000e+00> : vector<32xf32>
    %37 = vector.multi_reduction <add>, %36, %cst_19 [1] : vector<32x128xf32> to vector<32xf32>
    %38 = vector.shape_cast %37 : vector<32xf32> to vector<32x1xf32>
    %cst_20 = arith.constant 1.280000e+02 : f32
    %39 = vector.broadcast %cst_20 : f32 to vector<32x1xf32>
    %40 = arith.divf %38, %39 : vector<32x1xf32>
    %c0_21 = arith.constant 0 : index
    %c0_22 = arith.constant 0 : index
    %41 = vector.load %arg5[%c0_21, %c0_22] : memref<1x128xf32, #tpu.memory_space<vmem>>, vector<1x128xf32>
    %cst_23 = arith.constant 9.99999997E-7 : f32
    %42 = vector.broadcast %cst_23 : f32 to vector<32x1xf32>
    %43 = arith.addf %40, %42 : vector<32x1xf32>
    %44 = math.rsqrt %43 : vector<32x1xf32>
    %45 = vector.broadcast %44 : vector<32x1xf32> to vector<32x128xf32>
    %46 = arith.mulf %35, %45 : vector<32x128xf32>
    %47 = vector.broadcast %41 : vector<1x128xf32> to vector<32x128xf32>
    %48 = arith.mulf %47, %46 : vector<32x128xf32>
    %49 = arith.truncf %48 : vector<32x128xf32> to vector<32x128xbf16>
    %cst_24 = arith.constant dense<0.000000e+00> : vector<32x128xf32>
    %50 = tpu.matmul %32, %5, %cst_24 {dimension_numbers = #tpu.dot_dimension_numbers<[1], [0], [0], [1], [0, 0, 1, 1], [], []>} : vector<32x128xbf16>, vector<128x128xbf16>, vector<32x128xf32> -> vector<32x128xf32>
    %cst_25 = arith.constant dense<0.000000e+00> : vector<32x128xf32>
    %51 = tpu.matmul %49, %8, %cst_25 {dimension_numbers = #tpu.dot_dimension_numbers<[1], [0], [0], [1], [0, 0, 1, 1], [], []>} : vector<32x128xbf16>, vector<128x128xbf16>, vector<32x128xf32> -> vector<32x128xf32>
    %52 = arith.addf %50, %51 : vector<32x128xf32>
    %53 = vector.broadcast %11 : vector<1x128xf32> to vector<32x128xf32>
    %54 = arith.addf %52, %53 : vector<32x128xf32>
    %55 = vector.shape_cast %17 : vector<1x128xf32> to vector<1x128xf32>
    %56 = vector.broadcast %55 : vector<1x128xf32> to vector<32x128xf32>
    %57 = arith.truncf %54 : vector<32x128xf32> to vector<32x128xbf16>
    %cst_26 = arith.constant dense<0.000000e+00> : vector<32x128xf32>
    %58 = tpu.matmul %57, %14, %cst_26 {dimension_numbers = #tpu.dot_dimension_numbers<[1], [0], [0], [1], [0, 0, 1, 1], [], []>} : vector<32x128xbf16>, vector<128x128xbf16>, vector<32x128xf32> -> vector<32x128xf32>
    %59 = arith.addf %58, %56 : vector<32x128xf32>
    %60 = arith.negf %59 : vector<32x128xf32>
    %61 = math.exp %60 : vector<32x128xf32>
    %cst_27 = arith.constant 1.000000e+00 : f32
    %62 = vector.broadcast %cst_27 : f32 to vector<32x128xf32>
    %63 = arith.addf %62, %61 : vector<32x128xf32>
    %64 = arith.divf %62, %63 : vector<32x128xf32>
    %65 = arith.mulf %59, %64 : vector<32x128xf32>
    %66 = arith.addf %54, %65 : vector<32x128xf32>
    %67 = arith.truncf %66 : vector<32x128xf32> to vector<32x128xbf16>
    %cst_28 = arith.constant dense<0.000000e+00> : vector<32x128xf32>
    %68 = tpu.matmul %67, %14, %cst_28 {dimension_numbers = #tpu.dot_dimension_numbers<[1], [0], [0], [1], [0, 0, 1, 1], [], []>} : vector<32x128xbf16>, vector<128x128xbf16>, vector<32x128xf32> -> vector<32x128xf32>
    %69 = arith.addf %68, %56 : vector<32x128xf32>
    %70 = arith.negf %69 : vector<32x128xf32>
    %71 = math.exp %70 : vector<32x128xf32>
    %cst_29 = arith.constant 1.000000e+00 : f32
    %72 = vector.broadcast %cst_29 : f32 to vector<32x128xf32>
    %73 = arith.addf %72, %71 : vector<32x128xf32>
    %74 = arith.divf %72, %73 : vector<32x128xf32>
    %75 = arith.mulf %69, %74 : vector<32x128xf32>
    %76 = arith.addf %66, %75 : vector<32x128xf32>
    %c0_30 = arith.constant 0 : index
    %c0_31 = arith.constant 0 : index
    %77 = vector.load %arg12[%c0_30, %c0_31] : memref<32x128xf32, #tpu.memory_space<vmem>>, vector<32x128xf32>
    tpu.vector_store %arg12[%c0_30, %c0_31], %76 {strides = array<i32>} : memref<32x128xf32, #tpu.memory_space<vmem>>, vector<32x128xf32>,
    %78 = arith.truncf %76 : vector<32x128xf32> to vector<32x128xbf16>
    %c0_32 = arith.constant 0 : index
    %c0_33 = arith.constant 0 : index
    %c0_34 = arith.constant 0 : index
    %79 = vector.load %arg11[%c0_32, %c0_33, %c0_34] : memref<1x32x128xbf16, #tpu.memory_space<vmem>>, vector<1x32x128xbf16>
    %80 = vector.shape_cast %79 : vector<1x32x128xbf16> to vector<32x128xbf16>
    %81 = vector.shape_cast %78 : vector<32x128xbf16> to vector<1x32x128xbf16>
    tpu.vector_store %arg11[%c0_32, %c0_33, %c0_34], %81 {strides = array<i32>} : memref<1x32x128xbf16, #tpu.memory_space<vmem>>, vector<1x32x128xbf16>,
    return
  }
  func.func @transform_0(%arg0: i32, %arg1: i32) -> (i32, i32) {
    %c0_i32 = arith.constant 0 : i32
    %c0_i32_0 = arith.constant 0 : i32
    return %arg0, %c0_i32 : i32, i32
  }
  func.func @transform_1(%arg0: i32, %arg1: i32) -> (i32, i32, i32) {
    %c0_i32 = arith.constant 0 : i32
    %c0_i32_0 = arith.constant 0 : i32
    return %arg1, %arg0, %c0_i32 : i32, i32, i32
  }
  func.func @transform_2(%arg0: i32, %arg1: i32) -> (i32, i32) {
    %c0_i32 = arith.constant 0 : i32
    %c0_i32_0 = arith.constant 0 : i32
    %c0_i32_1 = arith.constant 0 : i32
    return %c0_i32, %c0_i32_0 : i32, i32
  }
  func.func @transform_3(%arg0: i32, %arg1: i32) -> (i32, i32) {
    %c0_i32 = arith.constant 0 : i32
    %c0_i32_0 = arith.constant 0 : i32
    %c0_i32_1 = arith.constant 0 : i32
    return %c0_i32, %c0_i32_0 : i32, i32
  }
  func.func @transform_4(%arg0: i32, %arg1: i32) -> (i32, i32, i32) {
    %c0_i32 = arith.constant 0 : i32
    %c0_i32_0 = arith.constant 0 : i32
    %c0_i32_1 = arith.constant 0 : i32
    %c0_i32_2 = arith.constant 0 : i32
    return %c0_i32, %c0_i32_0, %c0_i32_1 : i32, i32, i32
  }
  func.func @transform_5(%arg0: i32, %arg1: i32) -> (i32, i32, i32) {
    %c0_i32 = arith.constant 0 : i32
    %c0_i32_0 = arith.constant 0 : i32
    %c0_i32_1 = arith.constant 0 : i32
    %c0_i32_2 = arith.constant 0 : i32
    return %c0_i32, %c0_i32_0, %c0_i32_1 : i32, i32, i32
  }
  func.func @transform_6(%arg0: i32, %arg1: i32) -> (i32, i32, i32) {
    %c0_i32 = arith.constant 0 : i32
    %c0_i32_0 = arith.constant 0 : i32
    %c0_i32_1 = arith.constant 0 : i32
    %c0_i32_2 = arith.constant 0 : i32
    return %c0_i32, %c0_i32_0, %c0_i32_1 : i32, i32, i32
  }
  func.func @transform_7(%arg0: i32, %arg1: i32) -> (i32, i32, i32) {
    %c0_i32 = arith.constant 0 : i32
    %c0_i32_0 = arith.constant 0 : i32
    %c0_i32_1 = arith.constant 0 : i32
    %c0_i32_2 = arith.constant 0 : i32
    return %c0_i32, %c0_i32_0, %c0_i32_1 : i32, i32, i32
  }
  func.func @transform_8(%arg0: i32, %arg1: i32) -> (i32, i32, i32) {
    %c0_i32 = arith.constant 0 : i32
    %c0_i32_0 = arith.constant 0 : i32
    %c0_i32_1 = arith.constant 0 : i32
    %c0_i32_2 = arith.constant 0 : i32
    return %c0_i32, %c0_i32_0, %c0_i32_1 : i32, i32, i32
  }
  func.func @transform_9(%arg0: i32, %arg1: i32) -> (i32, i32, i32) {
    %c0_i32 = arith.constant 0 : i32
    %c0_i32_0 = arith.constant 0 : i32
    return %arg1, %arg0, %c0_i32 : i32, i32, i32
  }
}

</mosaic_0001>

<bundles_post_ra>
// kernel: tpu_custom_call.1
= control target key start
LH: loop header
LB: loop body
LE: loop exit
PB: predicated region body
PF: predicated region fallthrough
CT: control target
= control target key end

     0   :  { %s2690_s0 = inlined_call_operand.hbm [shape: f32[32,128], index: 0, kind: input, shape index: {}]   ;;  %s2691_s1 = inlined_call_operand.hbm [shape: bf16[4,32,128], index: 1, kind: input, shape index: {}]   ;;  %s2692_s2 = inlined_call_operand.hbm [shape: f32[1,128], index: 2, kind: input, shape index: {}]   ;;  %s2693_s3 = inlined_call_operand.hbm [shape: f32[1,128], index: 3, kind: input, shape index: {}]   ;;  %s2694_s4 = inlined_call_operand.hbm [shape: bf16[4,128,128], index: 4, kind: input, shape index: {}]   ;;  %s2695_s5 = inlined_call_operand.hbm [shape: bf16[4,128,128], index: 5, kind: input, shape index: {}]   ;;  %s2696_s6 = inlined_call_operand.hbm [shape: f32[4,1,128], index: 6, kind: input, shape index: {}]   ;;  %s2697_s7 = inlined_call_operand.hbm [shape: bf16[4,128,128], index: 7, kind: input, shape index: {}]   ;;  %s2698_s8 = inlined_call_operand.hbm [shape: f32[4,1,128], index: 8, kind: input, shape index: {}]   ;;  %s2699_s9 = inlined_call_operand.hbm [shape: bf16[4,32,128], index: 9, kind: output, shape index: {}]  }
   0x1   :  { %2708 = sst [smem:[#allocation26_spill]] %s2692_s2 }
   0x2   :  { %2709 = sst [smem:[#allocation27_spill]] %s2693_s3 }
   0x3   :  { %2710 = sst [smem:[#allocation28_spill]] %s2695_s5 }
   0x4   :  { %2711 = sst [smem:[#allocation29_spill]] %s2697_s7 }
   0x5   :  { %2712 = sst [smem:[#allocation30_spill]] %s2699_s9 }
   0x6   :  { %14 = vsyncpa [#allocation4], 0 }
   0x7   :  { %15 = vsyncpa [#allocation7], 0 }
   0x8   :  { %17 = vsyncpa [#allocation7 + $0x1], 0 }
   0x9   :  { %18 = vsyncpa [#allocation10], 0 }
   0xa   :  { %19 = vsyncpa [#allocation13], 0 }
   0xb   :  { %20 = vsyncpa [#allocation16], 0 }
   0xc   :  { %21 = vsyncpa [#allocation5], 0 }
   0xd   :  { %23 = vsyncpa [#allocation5 + $0x1], 0  ;;  %s2176_s30 = smov 0   ;;  %s2178_s10 = smov 0  }
   0xe   :  { %s2180_s11 = smov 0   ;;  %s2182_s12 = smov 0  }
   0xf   :  { %s2184_s13 = smov 0   ;;  %s2186_s14 = smov 0  }
  0x10 LB: > { %s2108_s15 = smov [#allocation8]   ;;  %s2207_s17 = sadd.s32 4294967295, %s2106_s14   ;;  %s2106_s14 = sphi %s2186_s14, %s29_s14   ;;  %s2102_s13 = sphi %s2184_s13, %s2746_s13   ;;  %s2098_s12 = sphi %s2182_s12, %s2745_s12   ;;  %s2094_s11 = sphi %s2180_s11, %s2744_s11   ;;  %s2090_s10 = sphi %s2178_s10, %s2743_s10   ;;  %s2086_s30 = sphi %s2176_s30, %s2742_s30  }
  0x11   : > { %s304_s16 = sshll.u32 %s2108_s15, 4  ;;  %p1300_p0 = scmp.ge.s32.totalorder %s2106_s14, 1  ;;  %s305_s16 = int_to_ptr.vmem [resolvable:$true] %s304_s16 }
  0x12   : > { %p2700_p1 = scmp.eq.s32.totalorder %s2207_s17, 0  ;;  %p275_p2 = scmp.lt.s32.totalorder %s2106_s14, 5 }
  0x13   : > { %s2109_s19 = smov [#allocation9]   ;;  %s2110_s22 = smov [#allocation12]  }
  0x14   : > { %p2212_p3 = pnand %p1300_p0, %p275_p2  ;;  %s315_s20 = sshll.u32 %s2109_s19, 4  ;;  %s2218_s20 = int_to_ptr.vmem [resolvable:$true] %s315_s20 }
  0x15   : > { %s338_s23 = sshll.u32 %s2110_s22, 4  ;;  %s2715_s2 = sld [smem:[#allocation26_spill]]  ;;  %s2226_s23 = int_to_ptr.vmem [resolvable:$true] %s338_s23 }
  0x16   : > { %s2713_s18 = scalar_select %p2212_p3, 1, 0 }
  0x17   : > { %p1563_p4 = pneg %p2212_p3 }
  0x19   : > { %p2222_p5 = pnand %p1563_p4, %p2700_p1 }
  0x1b   : > { %s1750_s26 = scalar_lea.hbm %s2715_s2, 16  ;;  %p2236_p7 = pneg %p2222_p5 }
  0x1c   : > { %p1751_p6 = scmp.ne.s32.totalorder %s2715_s2, %s1750_s26  ;;  %p1757_p10 = scmp.lt.u32.totalorder %s1750_s26, %s2715_s2 }
  0x1e   : > { %p1753_p8 = pnand %p2236_p7, %p1751_p6 }
  0x20   : > { %p1754_p9 = pneg %p1753_p8 }
  0x22   : > { %p1759_p11 = pnand %p1757_p10, %p1754_p9 }
  0x24   : > { %1762 = shalt.err (!%p1759_p11)
}
  0x25   : > { %s1763_s22 = scalar_lea.vmem %s305_s16, 16  ;;  %s1770_s24 = scalar_lea.vmem %s305_s16, 32 }
  0x26   : > { %p1764_p12 = scmp.ne.s32.totalorder %s305_s16, %s1763_s22  ;;  %p1771_p2 = scmp.lt.s32.totalorder %s305_s16, %s305_s16 }
  0x27   : > { %p1772_p4 = scmp.lt.s32.totalorder %s1770_s24, %s1763_s22 }
  0x28   : > { %p1766_p13 = pnand %p1764_p12, %p2236_p7 }
  0x29   : > { %p1773_p1 = por %p1772_p4, %p1771_p2 }
  0x2a   : > { %p1767_p0 = pneg %p1766_p13 }
  0x2c   : > { %p1774_p3 = pnand %p1773_p1, %p1767_p0 }
  0x2e   : > { %1777 = shalt.err (!%p1774_p3)
}
  0x2f   : > { %1569 = dma.hbm_to_vmem [thread:$0]  (!%p2222_p5), %s2715_s2, 16, %s305_s16, [#allocation7]  }
  0x30   : > { %s2717_s3 = sld [smem:[#allocation27_spill]] }
  0x36   : > { %s1778_s15 = scalar_lea.hbm %s2717_s3, 16 }
  0x37   : > { %p1779_p6 = scmp.ne.s32.totalorder %s2717_s3, %s1778_s15  ;;  %p1785_p1 = scmp.lt.u32.totalorder %s1778_s15, %s2717_s3 }
  0x39   : > { %p1781_p8 = pnand %p1779_p6, %p2236_p7 }
  0x3b   : > { %p1782_p9 = pneg %p1781_p8 }
  0x3d   : > { %p1787_p3 = pnand %p1785_p1, %p1782_p9 }
  0x3f   : > { %1790 = shalt.err (!%p1787_p3)
}
  0x40   : > { %s1791_s16 = scalar_lea.vmem %s2218_s20, 16  ;;  %s1798_s9 = scalar_lea.vmem %s2218_s20, 32 }
  0x41   : > { %p1792_p10 = scmp.ne.s32.totalorder %s2218_s20, %s1791_s16  ;;  %p1799_p13 = scmp.lt.s32.totalorder %s2218_s20, %s2218_s20 }
  0x42   : > { %p1800_p0 = scmp.lt.s32.totalorder %s1798_s9, %s1791_s16 }
  0x43   : > { %p1794_p11 = pnand %p1792_p10, %p2236_p7 }
  0x44   : > { %p1801_p2 = por %p1800_p0, %p1799_p13 }
  0x45   : > { %p1795_p12 = pneg %p1794_p11 }
  0x47   : > { %p1802_p4 = pnand %p1801_p2, %p1795_p12 }
  0x49   : > { %1805 = shalt.err (!%p1802_p4)
}
  0x4a   : > { %1572 = dma.hbm_to_vmem [thread:$0]  (!%p2222_p5), %s2717_s3, 16, %s2218_s20, [#allocation10]  }
  0x4b   : > { %s2718_s5 = sld [smem:[#allocation28_spill]] }
  0x51   : > { %s1806_s15 = scalar_lea.hbm %s2718_s5, 4096 }
  0x52   : > { %p1807_p6 = scmp.ne.s32.totalorder %s2718_s5, %s1806_s15  ;;  %p1813_p1 = scmp.lt.u32.totalorder %s1806_s15, %s2718_s5 }
  0x54   : > { %p1809_p8 = pnand %p1807_p6, %p2236_p7 }
  0x56   : > { %p1810_p9 = pneg %p1809_p8 }
  0x58   : > { %p1815_p3 = pnand %p1813_p1, %p1810_p9 }
  0x5a   : > { %1818 = shalt.err (!%p1815_p3)
}
  0x5b   : > { %s1819_s20 = scalar_lea.vmem %s2226_s23, 4096  ;;  %p1827_p13 = scmp.lt.s32.totalorder %s2226_s23, %s2226_s23 }
  0x5c   : > { %p1820_p10 = scmp.ne.s32.totalorder %s2226_s23, %s1819_s20  ;;  %p1828_p0 = scmp.lt.s32.totalorder %s1819_s20, %s1819_s20 }
  0x5e   : > { %p1822_p11 = pnand %p1820_p10, %p2236_p7  ;;  %p1829_p2 = por %p1828_p0, %p1827_p13 }
  0x60   : > { %p1823_p12 = pneg %p1822_p11 }
  0x62   : > { %p1830_p4 = pnand %p1829_p2, %p1823_p12 }
  0x64   : > { %1833 = shalt.err (!%p1830_p4)
}
  0x65   : > { %s2703_s9 = smov 64   ;;  %s2705_s25 = smov 4  }
  0x66   : > { %1578 = dma.hbm_to_vmem [thread:$0]  (!%p2222_p5), %s2718_s5, 4096, %s2226_s23, [#allocation13], %s2703_s9, %s2703_s9, %s2705_s25  }
  0x67   : > { %s2113_s28 = smov [#allocation15]   ;;  %s2719_s7 = sld [smem:[#allocation29_spill]] }
  0x68   : > { %s364_s15 = sshll.u32 %s2113_s28, 4  ;;  %s365_s15 = int_to_ptr.vmem [resolvable:$true] %s364_s15 }
  0x6d   : > { %s1834_s24 = scalar_lea.hbm %s2719_s7, 4096 }
  0x6e   : > { %p1835_p6 = scmp.ne.s32.totalorder %s2719_s7, %s1834_s24  ;;  %p1841_p1 = scmp.lt.u32.totalorder %s1834_s24, %s2719_s7 }
  0x70   : > { %p1837_p8 = pnand %p1835_p6, %p2236_p7 }
  0x72   : > { %p1838_p9 = pneg %p1837_p8 }
  0x74   : > { %p1843_p3 = pnand %p1841_p1, %p1838_p9 }
  0x76   : > { %1846 = shalt.err (!%p1843_p3)
}
  0x77   : > { %s1847_s23 = scalar_lea.vmem %s365_s15, 4096  ;;  %p1855_p13 = scmp.lt.s32.totalorder %s365_s15, %s365_s15 }
  0x78   : > { %p1848_p10 = scmp.ne.s32.totalorder %s365_s15, %s1847_s23  ;;  %p1856_p0 = scmp.lt.s32.totalorder %s1847_s23, %s1847_s23 }
  0x7a   : > { %p1850_p11 = pnand %p1848_p10, %p2236_p7  ;;  %p1857_p2 = por %p1856_p0, %p1855_p13 }
  0x7c   : > { %p1851_p12 = pneg %p1850_p11 }
  0x7e   : > { %p1858_p4 = pnand %p1857_p2, %p1851_p12 }
  0x80   : > { %1861 = shalt.err (!%p1858_p4)
}
  0x81   : > { %1584 = dma.hbm_to_vmem [thread:$0]  (!%p2222_p5), %s2719_s7, 4096, %s365_s15, [#allocation16], %s2703_s9, %s2703_s9, %s2705_s25  }
  0x82   : > { %s2114_s27 = smov [#allocation3]   ;;  %s1862_s22 = scalar_lea.hbm %s2690_s0, 512 }
  0x83   : > { %s290_s26 = sshll.u32 %s2114_s27, 4  ;;  %p1863_p6 = scmp.ne.s32.totalorder %s2690_s0, %s1862_s22  ;;  %s291_s26 = int_to_ptr.vmem [resolvable:$true] %s290_s26 }
  0x84   : > { %p1869_p1 = scmp.lt.u32.totalorder %s1862_s22, %s2690_s0 }
  0x85   : > { %p1865_p8 = pnand %p1863_p6, %p2236_p7 }
  0x87   : > { %p1866_p9 = pneg %p1865_p8 }
  0x89   : > { %p1871_p3 = pnand %p1869_p1, %p1866_p9 }
  0x8b   : > { %1874 = shalt.err (!%p1871_p3)
}
  0x8c   : > { %s1875_s15 = scalar_lea.vmem %s291_s26, 512  ;;  %p1883_p13 = scmp.lt.s32.totalorder %s291_s26, %s291_s26 }
  0x8d   : > { %p1876_p10 = scmp.ne.s32.totalorder %s291_s26, %s1875_s15  ;;  %p1884_p0 = scmp.lt.s32.totalorder %s1875_s15, %s1875_s15 }
  0x8f   : > { %p1878_p11 = pnand %p1876_p10, %p2236_p7  ;;  %p1885_p2 = por %p1884_p0, %p1883_p13 }
  0x91   : > { %p1879_p12 = pneg %p1878_p11 }
  0x93   : > { %p1886_p4 = pnand %p1885_p2, %p1879_p12 }
  0x95   : > { %1889 = shalt.err (!%p1886_p4)
}
  0x96   : > { %s2115_s2 = smov 128   ;;  %s2116_s3 = smov 8  }
  0x97   : > { %1566 = dma.hbm_to_vmem [thread:$0]  (!%p2222_p5), %s2690_s0, 512, %s291_s26, [#allocation4], %s2115_s2, %s2115_s2, %s2116_s3  }
  0x98   : > { %s2117_s19 = smov [#allocation11]   ;;  %s2118_s24 = smov [#allocation14]  }
  0x99   : > { %s325_s22 = sshll.u32 %s2117_s19, 4  ;;  %s351_s16 = sshll.u32 %s2118_s24, 4  ;;  %s326_s22 = int_to_ptr.vmem [resolvable:$true] %s325_s22  ;;  %s352_s16 = int_to_ptr.vmem [resolvable:$true] %s351_s16 }
  0x9a   : > { %s1890_s15 = scalar_lea.hbm %s2694_s4, 4096 }
  0x9b   : > { %p1891_p6 = scmp.ne.s32.totalorder %s2694_s4, %s1890_s15  ;;  %p1897_p1 = scmp.lt.u32.totalorder %s1890_s15, %s2694_s4 }
  0x9d   : > { %p1893_p8 = pnand %p1891_p6, %p2236_p7 }
  0x9f   : > { %p1894_p9 = pneg %p1893_p8 }
  0xa1   : > { %p1899_p3 = pnand %p1897_p1, %p1894_p9 }
  0xa3   : > { %1902 = shalt.err (!%p1899_p3)
}
  0xa4   : > { %s1903_s26 = scalar_lea.vmem %s326_s22, 4096  ;;  %p1911_p13 = scmp.lt.s32.totalorder %s326_s22, %s326_s22 }
  0xa5   : > { %p1904_p10 = scmp.ne.s32.totalorder %s326_s22, %s1903_s26  ;;  %p1912_p0 = scmp.lt.s32.totalorder %s1903_s26, %s1903_s26 }
  0xa7   : > { %p1906_p11 = pnand %p1904_p10, %p2236_p7  ;;  %p1913_p2 = por %p1912_p0, %p1911_p13 }
  0xa9   : > { %p1907_p12 = pneg %p1906_p11 }
  0xab   : > { %p1914_p4 = pnand %p1913_p2, %p1907_p12 }
  0xad   : > { %1917 = shalt.err (!%p1914_p4)
}
  0xae   : > { %s2720_s9 = smov 4   ;;  %s2721_s25 = smov 64  }
  0xaf   : > { %1575 = dma.hbm_to_vmem [thread:$0]  (!%p2222_p5), %s2694_s4, 4096, %s326_s22, [#allocation10], %s2721_s25, %s2721_s25, %s2720_s9  }
  0xb0   : > { %s1918_s27 = scalar_lea.hbm %s2696_s6, 64 }
  0xb1   : > { %p1919_p6 = scmp.ne.s32.totalorder %s2696_s6, %s1918_s27  ;;  %p1925_p1 = scmp.lt.u32.totalorder %s1918_s27, %s2696_s6 }
  0xb3   : > { %p1921_p8 = pnand %p1919_p6, %p2236_p7 }
  0xb5   : > { %p1922_p9 = pneg %p1921_p8 }
  0xb7   : > { %p1927_p3 = pnand %p1925_p1, %p1922_p9 }
  0xb9   : > { %1930 = shalt.err (!%p1927_p3)
}
  0xba   : > { %s1931_s23 = scalar_lea.vmem %s352_s16, 64  ;;  %p1939_p13 = scmp.lt.s32.totalorder %s352_s16, %s352_s16 }
  0xbb   : > { %p1932_p10 = scmp.ne.s32.totalorder %s352_s16, %s1931_s23  ;;  %p1940_p0 = scmp.lt.s32.totalorder %s1931_s23, %s1931_s23 }
  0xbd   : > { %p1934_p11 = pnand %p1932_p10, %p2236_p7  ;;  %p1941_p2 = por %p1940_p0, %p1939_p13 }
  0xbf   : > { %p1935_p12 = pneg %p1934_p11 }
  0xc1   : > { %p1942_p4 = pnand %p1941_p2, %p1935_p12 }
  0xc3   : > { %1945 = shalt.err (!%p1942_p4)
}
  0xc4   : > { %s2119_s22 = smov 16   ;;  %s2120_s15 = smov 1  }
  0xc5   : > { %1581 = dma.hbm_to_vmem [thread:$0]  (!%p2222_p5), %s2696_s6, 64, %s352_s16, [#allocation13], %s2119_s22, %s2119_s22, %s2120_s15  }
  0xc6   : > { %s2121_s7 = smov [#allocation17]   ;;  %s1946_s28 = scalar_lea.hbm %s2698_s8, 64 }
  0xc7   : > { %s377_s2 = sshll.u32 %s2121_s7, 4  ;;  %p1947_p6 = scmp.ne.s32.totalorder %s2698_s8, %s1946_s28  ;;  %s378_s2 = int_to_ptr.vmem [resolvable:$true] %s377_s2 }
  0xc8   : > { %p1953_p1 = scmp.lt.u32.totalorder %s1946_s28, %s2698_s8 }
  0xc9   : > { %p1949_p8 = pnand %p1947_p6, %p2236_p7 }
  0xcb   : > { %p1950_p9 = pneg %p1949_p8 }
  0xcd   : > { %p1955_p3 = pnand %p1953_p1, %p1950_p9 }
  0xcf   : > { %1958 = shalt.err (!%p1955_p3)
}
  0xd0   : > { %s1959_s16 = scalar_lea.vmem %s378_s2, 64  ;;  %p1967_p13 = scmp.lt.s32.totalorder %s378_s2, %s378_s2 }
  0xd1   : > { %p1960_p10 = scmp.ne.s32.totalorder %s378_s2, %s1959_s16  ;;  %p1968_p0 = scmp.lt.s32.totalorder %s1959_s16, %s1959_s16 }
  0xd3   : > { %p1962_p11 = pnand %p1960_p10, %p2236_p7  ;;  %p1969_p2 = por %p1968_p0, %p1967_p13 }
  0xd5   : > { %p1963_p12 = pneg %p1962_p11 }
  0xd7   : > { %p1970_p4 = pnand %p1969_p2, %p1963_p12 }
  0xd9   : > { %1973 = shalt.err (!%p1970_p4)
}
  0xda   : > { %1587 = dma.hbm_to_vmem [thread:$0]  (!%p2222_p5), %s2698_s8, 64, %s378_s2, [#allocation16], %s2119_s22, %s2119_s22, %s2120_s15  }
  0xdb   : > { %s1299_s29 = sadd.s32 4294967294, %s2106_s14   ;;  %s38_s7 = sadd.s32 1, %s2102_s13 }
  0xdc   : > { %p39_p7 = scmp.ge.s32.totalorder %s38_s7, 4  ;;  %s76_s21 = sadd.s32 1, %s2094_s11 }
  0xdd   : > { %p83_p6 = scmp.ne.s32.totalorder %s2094_s11, %s2090_s10  ;;  %p84_p8 = scmp.eq.s32.totalorder %s2106_s14, 0 }
  0xde   : > { %s2748_s7 = smov (%p39_p7, %s38_s7), 0  ;;  %p89_p1 = scmp.ne.s32.totalorder %s2090_s10, %s2086_s30 }
  0xdf   : > { %p2406_p9 = por %p84_p8, %p83_p6  ;;  %s71_s22 = ssub.s32 %s2102_s13, %s2748_s7 }
  0xe0   : > { %p262_p5 = scmp.eq.s32.totalorder %s2207_s17, 3  ;;  %p74_p3 = scmp.eq.s32.totalorder %s71_s22, 0 }
  0xe1   : > { %p2723_p10 = scmp.eq.s32.totalorder %s2207_s17, 0  ;;  %p268_p13 = scmp.eq.s32.totalorder %s1299_s29, 3 }
  0xe2   : > { %p2421_p12 = por %p262_p5, %p83_p6  ;;  %p1604_p2 = scmp.lt.s32.totalorder %s2106_s14, 4 }
  0xe3   : > { %p2417_p11 = por %p2723_p10, %p89_p1  ;;  %p2428_p0 = por %p268_p13, %p89_p1 }
  0xe4   : > { %s2725_s2 = scalar_select %p2421_p12, 1, 0 }
  0xe5   : > { %s2426_s27 = scalar_select %p74_p3, %s2094_s11, %s76_s21  }
  0xe6   : > { %s2726_s28 = scalar_select %p2428_p0, 1, 0 }
  0xe7   : > { %s391_s19 = sand.u32 1, %s2106_s14   ;;  %s393_s24 = sand.u32 1, %s2094_s11  }
  0xe8   : > { %s1310_s20 = sshll.u32 %s393_s24, 4  ;;  %s1374_s23 = sshll.u32 %s2102_s13, 8 }
  0xe9   : > { %s2439_s5 = scalar_lea.hbm %s2691_s1, %s1374_s23  ;;  %s395_s29 = scalar_lea.vmem [#allocation6], %s1310_s20 }
  0xea   : > { %s404_s21 = sshll.u32 %s395_s29, 4  ;;  %p2445_p4 = pnand %p1604_p2, %p2406_p9  ;;  %s2441_s21 = int_to_ptr.vmem [resolvable:$true] %s404_s21 }
  0xeb   : > { %s2449_s24 = scalar_lea.sflag [#allocation7], %s391_s19  ;;  %s1974_s16 = scalar_lea.hbm %s2439_s5, 256 }
  0xec   : > { %p1975_p7 = scmp.ne.s32.totalorder %s2439_s5, %s1974_s16  ;;  %p1976_p6 = pneg %p2445_p4 }
  0xed   : > { %s1979_s3 = scalar_lea.hbm %s2691_s1, 1024  ;;  %p1980_p9 = scmp.lt.u32.totalorder %s2439_s5, %s2691_s1 }
  0xee   : > { %p1977_p8 = pnand %p1976_p6, %p1975_p7  ;;  %p1981_p5 = scmp.lt.u32.totalorder %s1979_s3, %s1974_s16 }
  0xef   : > { %p1983_p10 = scmp.lt.u32.totalorder %s1974_s16, %s2439_s5 }
  0xf0   : > { %p1978_p1 = pneg %p1977_p8  ;;  %p1982_p3 = por %p1981_p5, %p1980_p9 }
  0xf2   : > { %p1984_p13 = por %p1983_p10, %p1982_p3 }
  0xf4   : > { %p1985_p2 = pnand %p1984_p13, %p1978_p1 }
  0xf6   : > { %1988 = shalt.err (!%p1985_p2)
}
  0xf7   : > { %s1989_s19 = scalar_lea.vmem %s2441_s21, 256  ;;  %s2122_s20 = smov [#allocation6]  }
  0xf8   : > { %p1990_p7 = scmp.ne.s32.totalorder %s2441_s21, %s1989_s19  ;;  %s1994_s23 = sshll.u32 %s2122_s20, 4  ;;  %s1995_s23 = int_to_ptr.vmem [resolvable:$false] %s1994_s23 }
  0xf9   : > { %s1996_s26 = scalar_lea.vmem %s1995_s23, 512  ;;  %p1997_p12 = scmp.lt.s32.totalorder %s2441_s21, %s1995_s23 }
  0xfa   : > { %p1992_p8 = pnand %p1990_p7, %p1976_p6  ;;  %p1998_p9 = scmp.lt.s32.totalorder %s1996_s26, %s1989_s19 }
  0xfc   : > { %p1993_p0 = pneg %p1992_p8  ;;  %p1999_p5 = por %p1998_p9, %p1997_p12 }
  0xfe   : > { %p2000_p3 = pnand %p1999_p5, %p1993_p0 }
 0x100   : > { %2003 = shalt.err (!%p2000_p3)
}
 0x101   : > { %1591 = dma.hbm_to_vmem [thread:$0]  (!%p2445_p4), %s2439_s5, 256, %s2441_s21, %s2449_s24, %s2721_s25, %s2721_s25, %s2720_s9  }
 0x102   : > { %p2728_p6 = scmp.ne.s32.totalorder %s2713_s18, 0 }
 0x103   : > { %p2729_p1 = scmp.eq.s32.totalorder (!%p2728_p6), %s2207_s17, 0 }
 0x104   : > { %416 = sbr.rel (%p2728_p6) target bundleno = 1233 (0x4d1), region = 56 }
 0x10b   : > { %2057 = dma.done.wait (%p2729_p1), [#allocation4], 512   ;;  %p2730_p10 = pmov %p2729_p1 }
 0x10c   : > { %s422_s22 = sand.u32 1, %s2207_s17   ;;  %s424_s16 = sand.u32 1, %s2090_s10  }
 0x10d   : > { %2059 = vsyncadd (%p2730_p10), [#allocation4], 4294966784  ;;  %s1315_s3 = sshll.u32 %s424_s16, 4  ;;  %s423_s29 = scalar_lea.sflag [#allocation7], %s422_s22 }
 0x10e   : > { %s426_s19 = scalar_lea.vmem [#allocation6], %s1315_s3 }
 0x10f   : > { %2061 = dma.done.wait (%p2417_p11), %s423_s29, 256  }
 0x110   : > { %2063 = vsyncadd (%p2417_p11), %s423_s29, 4294967040  ;;  %p2731_p12 = pmov %p2729_p1 }
 0x111   : > { %p2732_p0 = pmov %p2729_p1 }
 0x112   : > { %2065 = dma.done.wait (%p2731_p12), [#allocation7], 16  }
 0x113   : > { %2067 = vsyncadd (%p2732_p0), [#allocation7], 4294967280  ;;  %p2733_p4 = pmov %p2732_p0 }
 0x114   : > { %p2734_p13 = pmov %p2732_p0 }
 0x115   : > { %2069 = dma.done.wait (%p2733_p4), [#allocation10], 4112  }
 0x116   : > { %2071 = vsyncadd (%p2734_p13), [#allocation10], 4294963184  ;;  %p2735_p2 = pmov %p2732_p0 }
 0x117   : > { %p2736_p7 = pmov %p2732_p0 }
 0x118   : > { %2073 = dma.done.wait (%p2735_p2), [#allocation13], 4160  }
 0x119   : > { %2075 = vsyncadd (%p2736_p7), [#allocation13], 4294963136  ;;  %p2737_p11 = pmov %p2732_p0 }
 0x11a   : > { %p2738_p8 = pmov %p2732_p0 }
 0x11b   : > { %2077 = dma.done.wait (%p2737_p11), [#allocation16], 4160  }
 0x11c   : > { %2079 = vsyncadd (%p2738_p8), [#allocation16], 4294963136  ;;  %s2510_s18 = scalar_lea.vmem [#allocation18], %s1315_s3  ;;  %p1324_p9 = scmp.ne.s32.totalorder %s2098_s12, 0 }
 0x11d   : > { %v497_v0 = vld [vmem:[#allocation3] sm:$0xff] (!%p1324_p9)  ;;  %v498_v1 = vld [vmem:[#allocation3 + $0x8] sm:$0xff] (!%p1324_p9)  ;;  %v499_v2 = vld [vmem:[#allocation3 + $0x10] sm:$0xff] (!%p1324_p9) }
 0x11e   : > { %496 = sbr.rel (%p1324_p9) target bundleno = 293 (0x125), region = 96  ;;  %501 = vst [vmem:[#allocation2] sm:$0xff] (!%p1324_p9), %v497_v0  ;;  %502 = vst [vmem:[#allocation2 + $0x8] sm:$0xff] (!%p1324_p9), %v498_v1  ;;  %v500_v3 = vld [vmem:[#allocation3 + $0x18] sm:$0xff] (!%p1324_p9) }
 0x11f   : > { %503 = vst [vmem:[#allocation2 + $0x10] sm:$0xff] (!%p1324_p9), %v499_v2  ;;  %504 = vst [vmem:[#allocation2 + $0x18] sm:$0xff] (!%p1324_p9), %v500_v3 }
 0x125 PF: > { %v1401_v4 = vld [vmem:[%s426_s19 + $0x8] sm:$0xff]   ;;  %v1384_v5 = vld [vmem:[%s426_s19] sm:$0xff]   ;;  %s2514_s9 = sshll.u32 %s2098_s12, 6  ;;  %s542_s5 = scalar_lea.vmem [#allocation14], %s2098_s12 }
 0x126   : > { %v2516_v6 = vunpack.c.l.bf16 %v1401_v4  ;;  %v2518_v7 = vunpack.c.l.bf16 %v1384_v5  ;;  %v2520_v8 = vunpack.c.h.bf16 %v1401_v4  ;;  %v2522_v9 = vunpack.c.h.bf16 %v1384_v5  ;;  %s2525_s17 = scalar_lea.vmem [#allocation12], %s2514_s9  ;;  %v2533_v14 = vld [vmem:[#allocation2 + $0x8] sm:$0xff]  ;;  %v2535_v15 = vld [vmem:[#allocation2] sm:$0xff]  ;;  %v2541_v18 = vld [vmem:[#allocation2 + $0x18] sm:$0xff]  ;;  %s2546_s25 = scalar_lea.vmem [#allocation15], %s2514_s9 }
 0x127   : > { %v1678_v10 = vld [vmem:[%s2525_s17] sm:$0xff]   ;;  %v1679_v13 = vld [vmem:[%s2525_s17 + $0x8] sm:$0xff]   ;;  %v2543_v19 = vld [vmem:[#allocation2 + $0x10] sm:$0xff]  ;;  %v569_v20 = vmul.f32 %v2533_v14, %v2533_v14  ;;  %v568_v21 = vmul.f32 %v2535_v15, %v2535_v15  ;;  %v571_v22 = vmul.f32 %v2541_v18, %v2541_v18  ;;  %s2563_s15 = scalar_lea.vmem [#allocation11], %s2514_s9  ;;  %s562_s21 = scalar_lea.vmem [#allocation17], %s2098_s12 }
 0x128   : > { %v620_v11 = vmul.f32 %v2516_v6, %v2516_v6  ;;  %v618_v12 = vmul.f32 %v2518_v7, %v2518_v7  ;;  %1443 = vmatprep.subr.bf16.mxu0 %v1678_v10  ;;  %v621_v16 = vmul.f32 %v2520_v8, %v2520_v8  ;;  %v619_v17 = vmul.f32 %v2522_v9, %v2522_v9  ;;  %v1680_v24 = vld [vmem:[%s2525_s17 + $0x10] sm:$0xff]   ;;  %v1681_v25 = vld [vmem:[%s2525_s17 + $0x18] sm:$0xff]   ;;  %v1682_v26 = vld [vmem:[%s2525_s17 + $0x20] sm:$0xff]   ;;  %s1382_s24 = sshll.u32 %s2098_s12, 8  ;;  %s1123_s20 = sshll.u32 %s2510_s18, 4  ;;  %s2638_s20 = int_to_ptr.vmem [resolvable:$true] %s1123_s20 }
 0x129   : > { %1444 = vmatpush3.bf16.msra.mxu0 %v1678_v10  ;;  %v570_v23 = vmul.f32 %v2543_v19, %v2543_v19  ;;  %v1683_v27 = vld [vmem:[%s2525_s17 + $0x28] sm:$0xff]   ;;  %v1684_v28 = vld [vmem:[%s2525_s17 + $0x30] sm:$0xff]   ;;  %v1685_v29 = vld [vmem:[%s2525_s17 + $0x38] sm:$0xff]   ;;  %s2739_s22 = sld [smem:[#allocation30_spill]]  ;;  %s2644_s12 = scalar_lea.sflag [#allocation5], %s424_s16 }
 0x12a   : > { %626 = vadd.xlane.f32.xlu1 %v620_v11  ;;  %622 = vadd.xlane.f32.xlu0 %v618_v12  ;;  %v2566_v30 = vld [vmem:[%s2563_s15] sm:$0xff]   ;;  %v2573_v32 = vld [vmem:[%s2546_s25 + $0x8] sm:$0xff]   ;;  %v2579_v33 = vld [vmem:[%s2546_s25 + $0x10] sm:$0xff]   ;;  %s2004_s29 = scalar_lea.vmem %s2638_s20, 256  ;;  %p2740_p3 = scmp.ne.s32.totalorder %s2725_s2, 0 }
 0x12b   : > { %1445 = vmatprep.subr.bf16.mxu0 %v1679_v13  ;;  %v2570_v31 = vld [vmem:[%s2546_s25] sm:$0xff]   ;;  %v2584_v34 = vld [vmem:[%s2546_s25 + $0x18] sm:$0xff]   ;;  %v2594_v36 = vld [vmem:[%s2546_s25 + $0x28] sm:$0xff]   ;;  %p2005_p5 = scmp.ne.s32.totalorder %s2638_s20, %s2004_s29  ;;  %s2123_s19 = smov [#allocation18]  }
 0x12c   : > { %1483 = vmatprep.subr.bf16.mxu1 %v2570_v31  ;;  %v2589_v35 = vld [vmem:[%s2546_s25 + $0x20] sm:$0xff]   ;;  %s2008_s9 = sshll.u32 %s2123_s19, 4  ;;  %s2009_s9 = int_to_ptr.vmem [resolvable:$false] %s2008_s9 }
 0x12d   : > { %1446 = vmatpush3.bf16.msra.mxu0 %v1679_v13  ;;  %1484 = vmatpush3.bf16.msra.mxu1 %v2570_v31  ;;  %v1330_v59 = vld [vmem:[#allocation9] ss:$0 sm:$0xff]  ;;  %v1329_v10 = vld [vmem:[#allocation8] ss:$0 sm:$0xff]  ;;  %p2006_p6 = pnand %p2005_p5, %p2740_p3  ;;  %s2010_s17 = scalar_lea.vmem %s2009_s9, 512 }
 0x12e   : > { %628 = vadd.xlane.f32.xlu1 %v621_v16  ;;  %624 = vadd.xlane.f32.xlu0 %v619_v17  ;;  %v1687_v17 = vld [vmem:[%s2563_s15 + $0x8] sm:$0xff]   ;;  %p2011_p10 = scmp.lt.s32.totalorder %s2638_s20, %s2009_s9  ;;  %p2012_p12 = scmp.lt.s32.totalorder %s2010_s17, %s2004_s29 }
 0x12f   : > { %1447 = vmatprep.subr.bf16.mxu0 %v1680_v24  ;;  %1485 = vmatprep.subr.bf16.mxu1 %v2573_v32  ;;  %s2636_s3 = scalar_lea.hbm %s2739_s22, %s1382_s24  ;;  %p2007_p1 = pneg %p2006_p6 }
 0x130   : > { %p2013_p0 = por %p2012_p12, %p2011_p10 }
 0x131   : > { %1448 = vmatpush3.bf16.msra.mxu0 %v1680_v24  ;;  %1486 = vmatpush3.bf16.msra.mxu1 %v2573_v32 }
 0x132   : > { %574 = vadd.xlane.f32.xlu1 %v569_v20  ;;  %572 = vadd.xlane.f32.xlu0 %v568_v21  ;;  %p2014_p4 = pnand %p2013_p0, %p2007_p1 }
 0x133   : > { %1449 = vmatprep.subr.bf16.mxu0 %v1681_v25  ;;  %1487 = vmatprep.subr.bf16.mxu1 %v2579_v33 }
 0x135   : > { %1450 = vmatpush3.bf16.msra.mxu0 %v1681_v25  ;;  %1488 = vmatpush3.bf16.msra.mxu1 %v2579_v33  ;;  %v1690_v25 = vld [vmem:[%s2563_s15 + $0x20] sm:$0xff]  }
 0x136   : > { %578 = vadd.xlane.f32.xlu1 %v571_v22  ;;  %576 = vadd.xlane.f32.xlu0 %v570_v23  ;;  %v1688_v23 = vld [vmem:[%s2563_s15 + $0x10] sm:$0xff]  }
 0x137   : > { %1451 = vmatprep.subr.bf16.mxu0 %v1682_v26  ;;  %1489 = vmatprep.subr.bf16.mxu1 %v2584_v34 }
 0x139   : > { %1452 = vmatpush3.bf16.msra.mxu0 %v1682_v26  ;;  %1490 = vmatpush3.bf16.msra.mxu1 %v2584_v34  ;;  %v1691_v26 = vld [vmem:[%s2563_s15 + $0x28] sm:$0xff]  }
 0x13a   : > { %1453 = vmatprep.subr.bf16.mxu0 %v1683_v27  ;;  %1491 = vmatprep.subr.bf16.mxu1 %v2589_v35 }
 0x13d   : > { %1454 = vmatpush3.bf16.msra.mxu0 %v1683_v27  ;;  %1492 = vmatpush3.bf16.msra.mxu1 %v2589_v35 }
 0x13e   : > { %1455 = vmatprep.subr.bf16.mxu0 %v1684_v28  ;;  %1493 = vmatprep.subr.bf16.mxu1 %v2594_v36 }
 0x141   : > { %1456 = vmatpush3.bf16.msra.mxu0 %v1684_v28  ;;  %1494 = vmatpush3.bf16.msra.mxu1 %v2594_v36 }
 0x142   : > { %1457 = vmatprep.subr.bf16.mxu0 %v1685_v29 }
 0x145   : > { %1458 = vmatpush3.bf16.msra.mxu0 %v1685_v29  ;;  %v1692_v29 = vld [vmem:[%s2563_s15 + $0x30] sm:$0xff]  }
 0x146   : > { %1463 = vmatprep.subr.bf16.mxu0 %v2566_v30 }
 0x1b7   : > { %v627_v37 = vpop.xlane.xlu1 %626  ;;  %v623_v38 = vpop.xlane.xlu0 %622 }
 0x1b8   : > { %v632_v39 = vmul.f32 0.0078125, %v627_v37  ;;  %v630_v40 = vmul.f32 0.0078125, %v623_v38  ;;  %v1693_v38 = vld [vmem:[%s2563_s15 + $0x38] sm:$0xff]  }
 0x1ba   : > { %v637_v41 = vadd.f32 1e-06, %v632_v39  ;;  %v635_v42 = vadd.f32 1e-06, %v630_v40 }
 0x1bb   : > { %v629_v43 = vpop.xlane.xlu1 %628  ;;  %v625_v44 = vpop.xlane.xlu0 %624 }
 0x1bc   : > { %1702 = vrsqrt.f32 %v637_v41  ;;  %v633_v45 = vmul.f32 0.0078125, %v629_v43  ;;  %v631_v46 = vmul.f32 0.0078125, %v625_v44  ;;  %v1701_v43 = vld [vmem:[%s2546_s25 + $0x38] sm:$0xff]  }
 0x1bd   : > { %1704 = vrsqrt.f32 %v635_v42  ;;  %v1700_v42 = vld [vmem:[%s2546_s25 + $0x30] sm:$0xff]  }
 0x1be   : > { %v638_v47 = vadd.f32 1e-06, %v633_v45  ;;  %v636_v48 = vadd.f32 1e-06, %v631_v46  ;;  %1495 = vmatprep.subr.bf16.mxu1 %v1700_v42 }
 0x1bf   : > { %v575_v49 = vpop.xlane.xlu1 %574  ;;  %v573_v50 = vpop.xlane.xlu0 %572  ;;  %1496 = vmatpush3.bf16.msra.mxu1 %v1700_v42 }
 0x1c0   : > { %1706 = vrsqrt.f32 %v638_v47  ;;  %v582_v51 = vmul.f32 0.0078125, %v575_v49  ;;  %v581_v52 = vmul.f32 0.0078125, %v573_v50  ;;  %1497 = vmatprep.subr.bf16.mxu1 %v1701_v43 }
 0x1c1   : > { %1708 = vrsqrt.f32 %v636_v48 }
 0x1c2   : > { %v587_v53 = vadd.f32 1e-06, %v582_v51  ;;  %v586_v54 = vadd.f32 1e-06, %v581_v52 }
 0x1c3   : > { %v579_v5 = vpop.xlane.xlu1 %578  ;;  %v577_v12 = vpop.xlane.xlu0 %576  ;;  %1498 = vmatpush3.bf16.msra.mxu1 %v1701_v43 }
 0x1c4   : > { %1710 = vrsqrt.f32 %v587_v53  ;;  %v583_v20 = vmul.f32 0.0078125, %v577_v12  ;;  %1503 = vmatprep.subr.bf16.mxu1 %v2570_v31 }
 0x1c5   : > { %1712 = vrsqrt.f32 %v586_v54 }
 0x1c6   : > { %v1703_v55 = vpop.eup %1702 }
 0x1c7   : > { %v1705_v56 = vpop.eup %1704  ;;  %v645_v57 = vmul.f32 %v1703_v55, %v2516_v6 }
 0x1c8   : > { %v643_v60 = vmul.f32 %v1705_v56, %v2518_v7 }
 0x1c9   : > { %v655_v0 = vmul.f32 %v1330_v59, %v645_v57 }
 0x1ca   : > { %v1707_v58 = vpop.eup %1706  ;;  %v653_v3 = vmul.f32 %v1330_v59, %v643_v60 }
 0x1cb   : > { %v1709_v61 = vpop.eup %1708  ;;  %v646_v62 = vmul.f32 %v1707_v58, %v2520_v8  ;;  %v584_v8 = vmul.f32 0.0078125, %v579_v5 }
 0x1cc   : > { %v644_v63 = vmul.f32 %v1709_v61, %v2522_v9 }
 0x1cd   : > { %v656_v1 = vmul.f32 %v1330_v59, %v646_v62  ;;  %v589_v24 = vadd.f32 1e-06, %v584_v8 }
 0x1ce   : > { %v1711_v2 = vpop.eup %1710  ;;  %v654_v4 = vmul.f32 %v1330_v59, %v644_v63 }
 0x1cf   : > { %v1713_v11 = vpop.eup %1712  ;;  %v658_v6 = vpack.c.bf16 %v656_v1, %v655_v0  ;;  %v595_v13 = vmul.f32 %v1711_v2, %v2533_v14  ;;  %v588_v14 = vadd.f32 1e-06, %v583_v20  ;;  %1714 = vrsqrt.f32 %v589_v24 }
 0x1d0   : > { %v657_v7 = vpack.c.bf16 %v654_v4, %v653_v3  ;;  %v594_v16 = vmul.f32 %v1713_v11, %v2535_v15  ;;  %v1689_v15 = vld [vmem:[%s2563_s15 + $0x18] sm:$0xff]  }
 0x1d1   : > { %v605_v9 = vmul.f32 %v1329_v10, %v595_v13  ;;  %1716 = vrsqrt.f32 %v588_v14 }
 0x1d2   : > { %1459 = vmatprep.mubr.bf16.mxu0 %v657_v7  ;;  %v604_v21 = vmul.f32 %v1329_v10, %v594_v16 }
 0x1d3   : > { %1460 = vmatmul.mubr.bf16.vlgmr.msra.gmra.mrb[0].mxu0 %v658_v6 }
 0x1d4   : > { %1464 = vmatpush3.bf16.msra.mxu0 %v2566_v30  ;;  %v608_v22 = vpack.c.bf16 %v605_v9, %v604_v21 }
 0x1d5   : > { %1465 = vmatprep.subr.bf16.mxu0 %v1687_v17 }
 0x1d6   : > { %1479 = vmatprep.mubr.bf16.mxu0 %v608_v22 }
 0x1d8   : > { %1466 = vmatpush3.bf16.msra.mxu0 %v1687_v17 }
 0x1d9   : > { %1467 = vmatprep.subr.bf16.mxu0 %v1688_v23  ;;  %v1715_v27 = vpop.eup %1714 }
 0x1da   : > { %v597_v37 = vmul.f32 %v1715_v27, %v2541_v18 }
 0x1db   : > { %v1717_v28 = vpop.eup %1716 }
 0x1dc   : > { %1468 = vmatpush3.bf16.msra.mxu0 %v1688_v23  ;;  %v596_v30 = vmul.f32 %v1717_v28, %v2543_v19  ;;  %v607_v40 = vmul.f32 %v1329_v10, %v597_v37  ;;  %v1347_v19 = vld [vmem:[%s542_s5] ss:$0 sm:$0xff] }
 0x1dd   : > { %1469 = vmatprep.subr.bf16.mxu0 %v1689_v15 }
 0x1de   : > { %v606_v39 = vmul.f32 %v1329_v10, %v596_v30 }
 0x1e0   : > { %1470 = vmatpush3.bf16.msra.mxu0 %v1689_v15  ;;  %v609_v41 = vpack.c.bf16 %v607_v40, %v606_v39 }
 0x1e1   : > { %1471 = vmatprep.subr.bf16.mxu0 %v1690_v25 }
 0x1e4   : > { %1472 = vmatpush3.bf16.msra.mxu0 %v1690_v25 }
 0x1e5   : > { %1473 = vmatprep.subr.bf16.mxu0 %v1691_v26 }
 0x1e8   : > { %1474 = vmatpush3.bf16.msra.mxu0 %v1691_v26 }
 0x1e9   : > { %1475 = vmatprep.subr.bf16.mxu0 %v1692_v29 }
 0x1ec   : > { %1476 = vmatpush3.bf16.msra.mxu0 %v1692_v29 }
 0x1ed   : > { %1477 = vmatprep.subr.bf16.mxu0 %v1693_v38 }
 0x1f0   : > { %1478 = vmatpush3.bf16.msra.mxu0 %v1693_v38 }
 0x1f3   : > { %1480 = vmatmul.mubr.bf16.vlgmr.msra.gmra.mrb[0].mxu0 %v609_v41 }
 0x2c6   : > { %v1481_v18 = vpop.f32.mrb[0].mxu0 }
 0x2c7   : > { %v838_v44 = vpop.f32.mrb[1].mxu0  ;;  %v861_v50 = vadd.f32 %v1481_v18, %v1347_v19 }
 0x2c8   : > { %v1482_v45 = vpop.f32.mrb[2].mxu0  ;;  %v859_v48 = vadd.f32 %v1347_v19, %v838_v44 }
 0x2c9   : > { %v862_v46 = vadd.f32 %v1482_v45, %v1347_v19  ;;  %v841_v47 = vpop.f32.mrb[3].mxu0 }
 0x2ca   : > { %v860_v49 = vadd.f32 %v1347_v19, %v841_v47 }
 0x2cb   : > { %v870_v52 = vpack.c.bf16 %v862_v46, %v861_v50 }
 0x2cc   : > { %v869_v51 = vpack.c.bf16 %v860_v49, %v859_v48 }
 0x2ce   : > { %1499 = vmatprep.mubr.bf16.mxu1 %v869_v51 }
 0x2cf   : > { %1500 = vmatmul.mubr.bf16.vlgmr.msra.gmra.mrb[0].mxu1 %v870_v52 }
 0x2d0   : > { %1504 = vmatpush3.bf16.msra.mxu1 %v2570_v31  ;;  %v1348_v31 = vld [vmem:[%s562_s21] ss:$0 sm:$0xff] }
 0x2d1   : > { %1505 = vmatprep.subr.bf16.mxu1 %v2573_v32 }
 0x2d4   : > { %1506 = vmatpush3.bf16.msra.mxu1 %v2573_v32 }
 0x2d5   : > { %1507 = vmatprep.subr.bf16.mxu1 %v2579_v33 }
 0x2d8   : > { %1508 = vmatpush3.bf16.msra.mxu1 %v2579_v33 }
 0x2d9   : > { %1509 = vmatprep.subr.bf16.mxu1 %v2584_v34 }
 0x2dc   : > { %1510 = vmatpush3.bf16.msra.mxu1 %v2584_v34 }
 0x2dd   : > { %1511 = vmatprep.subr.bf16.mxu1 %v2589_v35 }
 0x2e0   : > { %1512 = vmatpush3.bf16.msra.mxu1 %v2589_v35 }
 0x2e1   : > { %1513 = vmatprep.subr.bf16.mxu1 %v2594_v36 }
 0x2e4   : > { %1514 = vmatpush3.bf16.msra.mxu1 %v2594_v36 }
 0x2e5   : > { %1515 = vmatprep.subr.bf16.mxu1 %v1700_v42 }
 0x2e8   : > { %1516 = vmatpush3.bf16.msra.mxu1 %v1700_v42 }
 0x2e9   : > { %1517 = vmatprep.subr.bf16.mxu1 %v1701_v43 }
 0x2ec   : > { %1518 = vmatpush3.bf16.msra.mxu1 %v1701_v43 }
 0x3a2   : > { %v1501_v32 = vpop.f32.mrb[0].mxu1 }
 0x3a3   : > { %v962_v33 = vadd.f32 %v1501_v32, %v1348_v31  ;;  %v953_v53 = vpop.f32.mrb[1].mxu1 }
 0x3a4   : > { %v954_v54 = vadd.f32 %v1348_v31, %v953_v53  ;;  %v1502_v55 = vpop.f32.mrb[2].mxu1 }
 0x3a5   : > { %v1359_v34 = vmul.f32 -1.442695, %v962_v33  ;;  %v965_v56 = vadd.f32 %v1502_v55, %v1348_v31  ;;  %v956_v57 = vpop.f32.mrb[3].mxu1 }
 0x3a6   : > { %v1357_v58 = vmul.f32 -1.442695, %v954_v54  ;;  %v957_v35 = vadd.f32 %v1348_v31, %v956_v57 }
 0x3a7   : > { %1718 = vpow2.f32 %v1359_v34  ;;  %v1360_v59 = vmul.f32 -1.442695, %v965_v56 }
 0x3a8   : > { %1720 = vpow2.f32 %v1357_v58  ;;  %v1358_v36 = vmul.f32 -1.442695, %v957_v35 }
 0x3a9   : > { %1722 = vpow2.f32 %v1360_v59 }
 0x3aa   : > { %1724 = vpow2.f32 %v1358_v36 }
 0x3b1   : > { %v1719_v60 = vpop.eup %1718 }
 0x3b2   : > { %v1721_v61 = vpop.eup %1720  ;;  %v982_v62 = vadd.f32 1.0, %v1719_v60 }
 0x3b3   : > { %v1723_v63 = vpop.eup %1722  ;;  %v980_v0 = vadd.f32 1.0, %v1721_v61 }
 0x3b4   : > { %v1725_v1 = vpop.eup %1724  ;;  %1726 = vrcp.f32 %v982_v62  ;;  %v983_v2 = vadd.f32 1.0, %v1723_v63 }
 0x3b5   : > { %1728 = vrcp.f32 %v980_v0  ;;  %v981_v3 = vadd.f32 1.0, %v1725_v1 }
 0x3b6   : > { %1730 = vrcp.f32 %v983_v2 }
 0x3b7   : > { %1732 = vrcp.f32 %v981_v3 }
 0x3be   : > { %v1727_v4 = vpop.eup %1726 }
 0x3bf   : > { %v1729_v5 = vpop.eup %1728  ;;  %v994_v12 = vmul.f32 %v1727_v4, %v962_v33 }
 0x3c0   : > { %v1731_v10 = vpop.eup %1730  ;;  %v992_v11 = vmul.f32 %v1729_v5, %v954_v54 }
 0x3c1   : > { %v1733_v6 = vpop.eup %1732  ;;  %v995_v13 = vmul.f32 %v1731_v10, %v965_v56  ;;  %v998_v9 = vadd.f32 %v994_v12, %v861_v50 }
 0x3c2   : > { %v993_v7 = vmul.f32 %v1733_v6, %v957_v35  ;;  %v996_v17 = vadd.f32 %v992_v11, %v859_v48 }
 0x3c3   : > { %v999_v16 = vadd.f32 %v995_v13, %v862_v46 }
 0x3c4   : > { %v997_v8 = vadd.f32 %v993_v7, %v860_v49 }
 0x3c5   : > { %v1001_v21 = vpack.c.bf16 %v999_v16, %v998_v9 }
 0x3c6   : > { %v1000_v20 = vpack.c.bf16 %v997_v8, %v996_v17 }
 0x3c8   : > { %1519 = vmatprep.mubr.bf16.mxu1 %v1000_v20 }
 0x3c9   : > { %1520 = vmatmul.mubr.bf16.vlgmr.msra.gmra.mrb[4].mxu1 %v1001_v21 }
 0x49c   : > { %v1521_v22 = vpop.f32.mrb[4].mxu1 }
 0x49d   : > { %v1045_v23 = vadd.f32 %v1521_v22, %v1348_v31  ;;  %v1036_v24 = vpop.f32.mrb[5].mxu1 }
 0x49e   : > { %v1037_v14 = vadd.f32 %v1348_v31, %v1036_v24  ;;  %v1522_v15 = vpop.f32.mrb[6].mxu1 }
 0x49f   : > { %v1363_v25 = vmul.f32 -1.442695, %v1045_v23  ;;  %v1048_v26 = vadd.f32 %v1522_v15, %v1348_v31  ;;  %v1039_v27 = vpop.f32.mrb[7].mxu1 }
 0x4a0   : > { %v1361_v28 = vmul.f32 -1.442695, %v1037_v14  ;;  %v1040_v29 = vadd.f32 %v1348_v31, %v1039_v27 }
 0x4a1   : > { %1734 = vpow2.f32 %v1363_v25  ;;  %v1364_v30 = vmul.f32 -1.442695, %v1048_v26 }
 0x4a2   : > { %1736 = vpow2.f32 %v1361_v28  ;;  %v1362_v37 = vmul.f32 -1.442695, %v1040_v29 }
 0x4a3   : > { %1738 = vpow2.f32 %v1364_v30 }
 0x4a4   : > { %1740 = vpow2.f32 %v1362_v37 }
 0x4ab   : > { %v1735_v38 = vpop.eup %1734 }
 0x4ac   : > { %v1737_v39 = vpop.eup %1736  ;;  %v1065_v40 = vadd.f32 1.0, %v1735_v38 }
 0x4ad   : > { %v1739_v41 = vpop.eup %1738  ;;  %v1063_v42 = vadd.f32 1.0, %v1737_v39 }
 0x4ae   : > { %v1741_v43 = vpop.eup %1740  ;;  %1742 = vrcp.f32 %v1065_v40  ;;  %v1066_v18 = vadd.f32 1.0, %v1739_v41 }
 0x4af   : > { %1744 = vrcp.f32 %v1063_v42  ;;  %v1064_v19 = vadd.f32 1.0, %v1741_v43 }
 0x4b0   : > { %1746 = vrcp.f32 %v1066_v18 }
 0x4b1   : > { %1748 = vrcp.f32 %v1064_v19 }
 0x4b8   : > { %v1743_v44 = vpop.eup %1742 }
 0x4b9   : > { %v1745_v45 = vpop.eup %1744  ;;  %v1077_v46 = vmul.f32 %v1743_v44, %v1045_v23 }
 0x4ba   : > { %v1747_v47 = vpop.eup %1746  ;;  %v1075_v48 = vmul.f32 %v1745_v45, %v1037_v14 }
 0x4bb   : > { %v1749_v49 = vpop.eup %1748  ;;  %v1081_v50 = vadd.f32 %v1077_v46, %v998_v9  ;;  %v1078_v51 = vmul.f32 %v1747_v47, %v1048_v26 }
 0x4bc   : > { %v1079_v52 = vadd.f32 %v1075_v48, %v996_v17  ;;  %v1076_v31 = vmul.f32 %v1749_v49, %v1040_v29 }
 0x4bd   : > { %1085 = vst [vmem:[#allocation2 + $0x10] sm:$0xff] %v1081_v50  ;;  %v1082_v32 = vadd.f32 %v1078_v51, %v999_v16 }
 0x4be   : > { %1083 = vst [vmem:[#allocation2] sm:$0xff] %v1079_v52  ;;  %v1080_v33 = vadd.f32 %v1076_v31, %v997_v8 }
 0x4bf   : > { %1086 = vst [vmem:[#allocation2 + $0x18] sm:$0xff] %v1082_v32  ;;  %v1399_v53 = vpack.c.bf16 %v1082_v32, %v1081_v50 }
 0x4c0   : > { %1084 = vst [vmem:[#allocation2 + $0x8] sm:$0xff] %v1080_v33  ;;  %v1394_v54 = vpack.c.bf16 %v1080_v33, %v1079_v52 }
 0x4c1   : > { %1402 = vst [vmem:[%s2510_s18 + $0x8] sm:$0xff] %v1399_v53  }
 0x4c2   : > { %1395 = vst [vmem:[%s2510_s18] sm:$0xff] %v1394_v54  }
 0x4c3   : > { %2017 = shalt.err (!%p2014_p4)
}
 0x4c4   : > { %s2018_s16 = scalar_lea.hbm %s2636_s3, 256  ;;  %s2022_s15 = scalar_lea.hbm %s2739_s22, 1024 }
 0x4c5   : > { %p2019_p13 = scmp.ne.s32.totalorder %s2636_s3, %s2018_s16  ;;  %p2023_p11 = scmp.lt.u32.totalorder %s2636_s3, %s2739_s22 }
 0x4c6   : > { %p2024_p8 = scmp.lt.u32.totalorder %s2022_s15, %s2018_s16  ;;  %p2026_p5 = scmp.lt.u32.totalorder %s2018_s16, %s2636_s3 }
 0x4c7   : > { %p2020_p2 = pnand %p2019_p13, %p2740_p3 }
 0x4c8   : > { %p2025_p9 = por %p2024_p8, %p2023_p11 }
 0x4c9   : > { %p2021_p7 = pneg %p2020_p2 }
 0x4ca   : > { %p2027_p6 = por %p2026_p5, %p2025_p9 }
 0x4cc   : > { %p2028_p1 = pnand %p2027_p6, %p2021_p7 }
 0x4ce   : > { %2031 = shalt.err (!%p2028_p1)
}
 0x4cf   : > { %s2124_s24 = smov 64   ;;  %s2125_s23 = smov 4  }
 0x4d0   : > { %1561 = dma.vmem_to_hbm [thread:$0]  (%p2740_p3), %s2638_s20, 256, %s2636_s3, %s2644_s12, %s2124_s24, %s2124_s24, %s2125_s23  }
 0x4d1 PF: > { %p1613_p10 = scmp.ge.s32.totalorder %s2106_s14, 2  ;;  %s1138_s26 = sand.u32 1, %s2086_s30  }
 0x4d2   : > { %p2741_p12 = scmp.ne.s32.totalorder %s2726_s28, 0  ;;  %s1139_s29 = scalar_lea.sflag [#allocation5], %s1138_s26 }
 0x4d4   : > { %p1593_p0 = pnand %p1613_p10, %p2741_p12 }
 0x4d6   : > { %2081 = dma.done.wait (!%p1593_p0), %s1139_s29, 256  }
 0x4d7   : > { %2083 = vsyncadd (!%p1593_p0), %s1139_s29, 4294967040  ;;  %s29_s14 = sadd.s32 1, %s2106_s14   ;;  %s2742_s30 = smov %s2090_s10 }
 0x4d8   : > { %p26_p4 = scmp.ge.s32.totalorder %s29_s14, 6   ;;  %s2743_s10 = smov %s2094_s11 }
 0x4d9   : > { %s2744_s11 = smov %s2426_s27  ;;  %s2745_s12 = smov %s2102_s13 }
 0x4da   : > { %s2746_s13 = smov %s2748_s7  ;;  %28 = sbr.rel (!%p26_p4) target bundleno = 16 (0x10), region = 144 }
 0x4e1   :  { %1144 = vsyncpa [#allocation4], 1 }
 0x4e2   :  { %1146 = vsyncpa [#allocation4 + $0x1], 1 }
 0x4e3   :  { %1147 = vsyncpa [#allocation7], 1 }
 0x4e4   :  { %1149 = vsyncpa [#allocation7 + $0x1], 1 }
 0x4e5   :  { %1150 = vsyncpa [#allocation10], 1 }
 0x4e6   :  { %1151 = vsyncpa [#allocation13], 1 }
 0x4e7   :  { %1152 = vsyncpa [#allocation16], 1 }
 0x4e8   :  { %1153 = vsyncpa [#allocation5], 1 }
 0x4e9   :  { %1155 = vsyncpa [#allocation5 + $0x1], 1 }

</bundles_post_ra>
